<compile_context>
chip_gen: v7x
topology: tpu7x:2x2x1
jax: 0.10.0
libtpu: 0.0.40
codegen_flags: <defaults>
</compile_context>

<pallas_src>
import functools
import math

import jax
import jax.numpy as jnp
from jax.experimental import pallas as pl
from jax.experimental.pallas import tpu as pltpu

_HALF_LOG_2PI = 0.5 * math.log(2.0 * math.pi)
_PAD_LOGIT = -30.0      # softplus(-30) ~ 9e-14  ->  alpha ~ 1  ->  padded lanes
                        # contribute ~0 to every KL/log term automatically.


# -----------------------------------------------------------------------------
# lgamma / digamma have no native Pallas-TPU lowering.  Fused implementation:
# recurrence shift (single product, single division) + Stirling/asymptotic
# series sharing one log(z) and one 1/z.  Accurate to ~1e-6 abs for
# x + n_shift >= 5, which the callers guarantee for every lane whose value is
# actually consumed.
# -----------------------------------------------------------------------------
def _lgamma_digamma(x, n_shift):
    if n_shift == 4:
        w = x * (x + 3.0)                     # x (x+3)
        v = w + 2.0                           # (x+1)(x+2)
        prod = w * v                          # x(x+1)(x+2)(x+3)
        z = x + 4.0
        lg_shift = jnp.log(prod)              # sum_i log(x+i)  (one EUP log)
        dg_shift = (2.0 * x + 3.0) * (w + v) / prod   # sum_i 1/(x+i) = D'/D
    else:
        z = x
        lg_shift = None
        dg_shift = None
    log_z = jnp.log(z)
    zi = 1.0 / z
    zi2 = zi * zi
    lgam = ((z - 0.5) * log_z - z + _HALF_LOG_2PI
            + zi * (1.0 / 12.0
                    + zi2 * (-1.0 / 360.0
                             + zi2 * (1.0 / 1260.0 - zi2 * (1.0 / 1680.0)))))
    dig = (log_z - 0.5 * zi
           - zi2 * (1.0 / 12.0 - zi2 * (1.0 / 120.0 - zi2 * (1.0 / 252.0))))
    if n_shift:
        lgam = lgam - lg_shift
        dig = dig - dg_shift
    return lgam, dig


# -----------------------------------------------------------------------------
# Per-lane loss contributions on the packed (rows, 128) layout.
# Summing `core` over one sample's C_pad lanes gives  log_loss_n + lam * kl_n,
# summing `cor` gives cor_n (the scalar cor term is its mean over N).
# `bind` is a precomputed (128, 128) bf16 block-indicator: bind[j, c] = 1 iff
# lanes j and c belong to the same packed sample AND lane j is a real class.
# -----------------------------------------------------------------------------
def _edl_lane_terms(pred, onehot_f32, bind, *, num_classes, lam, lgamma_k):
    k = jnp.float32(num_classes)
    is_t = onehot_f32 > 0.5

    # evidence = softplus(pred); alpha = evidence + 1   (stable softplus)
    evidence = jnp.maximum(pred, 0.0) + jnp.log(1.0 + jnp.exp(-jnp.abs(pred)))
    alpha = evidence + 1.0

    # --- per-sample sum S = sum_c alpha, broadcast to each of the sample's
    #     lanes, via the block-indicator matmul on the (idle) MXU.  bf16 hi/lo
    #     split keeps the sum accurate to ~4e-6 relative.  Padded class lanes
    #     are already zeroed inside `bind` (built on the host). ---
    a_hi = alpha.astype(jnp.bfloat16)
    a_lo = (alpha - a_hi.astype(jnp.float32)).astype(jnp.bfloat16)
    s = (jnp.dot(a_hi, bind, preferred_element_type=jnp.float32)
         + jnp.dot(a_lo, bind, preferred_element_type=jnp.float32))
    s = jnp.maximum(s, 1.0)

    # --- per-element part of the Dirichlet KL.
    # alpha_hat = alpha away from the target class and 1 at the target class;
    # padded lanes have alpha ~ 1 (pred padded with _PAD_LOGIT) so they also
    # contribute ~0 without any extra masking.
    lg_a, dg_a = _lgamma_digamma(alpha, n_shift=4)
    kl_elem = jnp.where(is_t, 0.0, (alpha - 1.0) * dg_a - lg_a)

    # --- per-sample parts, evaluated per lane and gated onto the target lane.
    # s_hat_lane equals sum_c alpha_hat exactly at the target lane.
    s_hat = s + 1.0 - alpha
    lg_sh, dg_sh = _lgamma_digamma(s_hat, n_shift=0 if num_classes >= 5 else 4)
    per_sample = (jnp.log(s) - jnp.log(alpha)
                  + lam * (lg_sh - lgamma_k - (s_hat - k) * dg_sh))
    core = lam * kl_elem + jnp.where(is_t, per_sample, 0.0)
    # cor term: -(K/S) * log(alpha - 1 + 1e-5) == -(K/S) * log(evidence + 1e-5)
    cor = jnp.where(is_t, -(k / s) * jnp.log(evidence + 1e-5), 0.0)
    return core, cor


def _edl_sum_kernel(pred_ref, oh_ref, bind_ref, part_ref, *, num_classes, lam,
                    lgamma_k):
    core, cor = _edl_lane_terms(pred_ref[...], oh_ref[...].astype(jnp.float32),
                                bind_ref[...], num_classes=num_classes,
                                lam=lam, lgamma_k=lgamma_k)
    tile_sum = jnp.sum(core + cor, axis=0, keepdims=True)          # (1, 128)
    # Replicate into a lane-dense (8, 128) block scaled by 1/8 (exact power of
    # two) so a plain jnp.sum over all partials recovers the exact total while
    # every grid step writes a disjoint, aligned block (grid stays "parallel").
    part_ref[...] = 0.125 * tile_sum + jnp.zeros((8, 128), jnp.float32)


def _edl_none_kernel(pred_ref, oh_ref, bind_ref, core_ref, corp_ref, *,
                     num_classes, lam, lgamma_k):
    core, cor = _edl_lane_terms(pred_ref[...], oh_ref[...].astype(jnp.float32),
                                bind_ref[...], num_classes=num_classes,
                                lam=lam, lgamma_k=lgamma_k)
    core_ref[...] = core
    cor_sum = jnp.sum(cor, axis=0, keepdims=True)
    corp_ref[...] = 0.125 * cor_sum + jnp.zeros((8, 128), jnp.float32)


def _round_up(x, m):
    return ((x + m - 1) // m) * m


def old_edl_loss(pred, target, weight=None, avg_factor=None, current_epoch=None,
                 reduction_override=None, *, lambdat=1.0, reduction='mean',
                 loss_weight=1.0, max_tile_rows=1024):
    """Pallas TPU implementation of OLDEDLLoss.forward (weight=None path)."""
    assert reduction_override in (None, 'none', 'mean', 'sum')
    reduction = reduction_override if reduction_override else reduction
    if current_epoch is None:
        raise ValueError('current_epoch must be provided (same as reference).')
    assert weight is None  # TODO(synk): sample-wise `weight` path not implemented
    n, c = pred.shape
    # TODO(synk): num_classes > 128 would need an unpacked (N, C) layout path.
    assert c <= 128, 'num_classes > 128 not supported by the packed kernel'

    lam = float(min(lambdat, lambdat * (current_epoch - 1) / 10.0))
    c_pad = max(1, pl.next_power_of_2(c))           # lane segment per sample
    p = 128 // c_pad                                # samples packed per row
    rows = pl.cdiv(n, p)
    max_tile_rows = max(16, _round_up(max_tile_rows, 16))
    if rows <= max_tile_rows:
        tile_rows = _round_up(rows, 16)             # 16: bf16 sublane tiling
        rows_pad = tile_rows
    else:
        tile_rows = max_tile_rows
        rows_pad = _round_up(rows, tile_rows)
    n_pad = rows_pad * p
    grid = rows_pad // tile_rows

    # Pack:  sample i -> row i // p, lanes [(i % p) * c_pad, ... + c_pad).
    pred_p = jnp.pad(pred.astype(jnp.float32),
                     ((0, n_pad - n), (0, c_pad - c)),
                     constant_values=_PAD_LOGIT).reshape(rows_pad, 128)
    onehot = jax.nn.one_hot(target, c_pad, dtype=jnp.float32)
    onehot = jnp.pad(onehot, ((0, n_pad - n), (0, 0)))
    onehot = onehot.astype(jnp.bfloat16).reshape(rows_pad, 128)

    # Block-indicator matrix (built once on host, constant VMEM block in-kernel):
    # bind[j, c] = 1 iff lanes j and c are in the same packed-sample block and
    # lane j corresponds to a real (non-padded) class.
    lane = jnp.arange(128, dtype=jnp.int32)
    same_blk = (lane[:, None] // c_pad) == (lane[None, :] // c_pad)
    valid_row = (lane % c_pad) < c
    bind = (same_blk & valid_row[:, None]).astype(jnp.bfloat16)     # (128, 128)

    kern_kwargs = dict(num_classes=c, lam=lam, lgamma_k=float(math.lgamma(c)))
    in_specs = [pl.BlockSpec((tile_rows, 128), lambda i: (i, 0)),
                pl.BlockSpec((tile_rows, 128), lambda i: (i, 0)),
                pl.BlockSpec((128, 128), lambda i: (0, 0))]
    cparams = pltpu.CompilerParams(dimension_semantics=("parallel",))

    if reduction == 'none':
        core_lane, cor_part = pl.pallas_call(
            functools.partial(_edl_none_kernel, **kern_kwargs),
            out_shape=(jax.ShapeDtypeStruct((rows_pad, 128), jnp.float32),
                       jax.ShapeDtypeStruct((grid * 8, 128), jnp.float32)),
            grid_spec=pltpu.PrefetchScalarGridSpec(
                num_scalar_prefetch=0, grid=(grid,),
                in_specs=in_specs,
                out_specs=(pl.BlockSpec((tile_rows, 128), lambda i: (i, 0)),
                           pl.BlockSpec((8, 128), lambda i: (i, 0)))),
            compiler_params=cparams,
        )(pred_p, onehot, bind)
        core = core_lane.reshape(n_pad, c_pad)[:n].sum(axis=1)    # (N,)
        cor_mean = jnp.sum(cor_part) / n
        loss = core + cor_mean
        # weight_reduce_loss with reduction='none' leaves the loss untouched.
        return loss_weight * loss

    partial = pl.pallas_call(
        functools.partial(_edl_sum_kernel, **kern_kwargs),
        out_shape=jax.ShapeDtypeStruct((grid * 8, 128), jnp.float32),
        grid_spec=pltpu.PrefetchScalarGridSpec(
            num_scalar_prefetch=0, grid=(grid,),
            in_specs=in_specs,
            out_specs=pl.BlockSpec((8, 128), lambda i: (i, 0))),
        compiler_params=cparams,
    )(pred_p, onehot, bind)
    total = jnp.sum(partial)   # == sum_n (log_loss_n + lam*kl_n + cor_mean)

    if avg_factor is None:
        loss = total / n if reduction == 'mean' else total
    else:
        if reduction == 'mean':
            loss = total / avg_factor
        else:
            raise ValueError('avg_factor can not be used with reduction="sum"')
    return loss_weight * loss


# ----------------------------- reference (pure JAX) ---------------------------
def _reference(pred, target, lambdat=1.0, loss_weight=1.0, current_epoch=3,
               reduction='mean', avg_factor=None):
    from jax.scipy.special import digamma, gammaln
    n, c = pred.shape
    lam = min(lambdat, lambdat * (current_epoch - 1) / 10.0)
    onehot = jax.nn.one_hot(target, c, dtype=jnp.float32)
    alpha = jax.nn.softplus(pred.astype(jnp.float32)) + 1.0
    s = alpha.sum(1, keepdims=True)
    log_l = (onehot * (jnp.log(s) - jnp.log(alpha))).sum(1)
    alpha_hat = onehot + (1.0 - onehot) * alpha
    s_hat = alpha_hat.sum(1, keepdims=True)
    kl = (gammaln(s_hat) - gammaln(jnp.float32(c))
          - gammaln(alpha_hat).sum(1, keepdims=True)
          + ((alpha_hat - 1.0) * (digamma(alpha_hat) - digamma(s_hat)))
          .sum(1, keepdims=True))[:, 0]
    u = c / s
    cor = (-onehot * u * jnp.log(alpha - 1.0 + 1e-5)).sum(1).mean()
    loss = log_l + lam * kl + cor
    if avg_factor is None:
        if reduction == 'mean':
            loss = loss.mean()
        elif reduction == 'sum':
            loss = loss.sum()
    else:
        if reduction == 'mean':
            loss = loss.sum() / avg_factor
    return loss_weight * loss


if __name__ == "__main__":
    # 1) Demo shapes: 64 samples, 16 classes, reduction='mean'.
    key = jax.random.PRNGKey(0)
    n_samples, n_classes = 64, 16
    kp, kt = jax.random.split(key)
    pred = 2.0 * jax.random.normal(kp, (n_samples, n_classes), jnp.float32)
    target = jax.random.randint(kt, (n_samples,), 0, n_classes, dtype=jnp.int32)

    out = jax.block_until_ready(
        old_edl_loss(pred, target, current_epoch=3,
                     lambdat=1.0, loss_weight=1.0, reduction='mean'))
    exp = _reference(pred, target, lambdat=1.0, loss_weight=1.0,
                     current_epoch=3, reduction='mean')
    assert jnp.allclose(out, exp, rtol=2e-3, atol=2e-3), (out, exp)

    # 2) Non-power-of-two class count + sample padding + reduction='sum'.
    n2, c2 = 50, 15
    kp2, kt2 = jax.random.split(jax.random.PRNGKey(1))
    pred2 = 3.0 * jax.random.normal(kp2, (n2, c2), jnp.float32)
    target2 = jax.random.randint(kt2, (n2,), 0, c2, dtype=jnp.int32)
    out2 = jax.block_until_ready(
        old_edl_loss(pred2, target2, current_epoch=7, lambdat=1.0,
                     loss_weight=0.5, reduction='sum'))
    exp2 = _reference(pred2, target2, lambdat=1.0, loss_weight=0.5,
                      current_epoch=7, reduction='sum')
    assert jnp.allclose(out2, exp2, rtol=2e-3, atol=2e-3), (out2, exp2)

    # 3) reduction='none' (per-sample losses).
    out3 = jax.block_until_ready(
        old_edl_loss(pred, target, current_epoch=3, reduction_override='none'))
    exp3 = _reference(pred, target, current_epoch=3, reduction='none')
    assert jnp.allclose(out3, exp3, rtol=2e-3, atol=2e-3), (out3, exp3)

    # 4) Multi-tile grid (grid > 1) exercising the parallel partial outputs.
    n4, c4 = 1000, 16
    kp4, kt4 = jax.random.split(jax.random.PRNGKey(2))
    pred4 = 2.0 * jax.random.normal(kp4, (n4, c4), jnp.float32)
    target4 = jax.random.randint(kt4, (n4,), 0, c4, dtype=jnp.int32)
    out4 = jax.block_until_ready(
        old_edl_loss(pred4, target4, current_epoch=11, reduction='mean',
                     max_tile_rows=32))
    exp4 = _reference(pred4, target4, current_epoch=11, reduction='mean')
    assert jnp.allclose(out4, exp4, rtol=2e-3, atol=2e-3), (out4, exp4)

    print("KERNEL_OK")
</pallas_src>

<mosaic_0001>
module attributes {stable_mosaic.version = 11 : i64} {
  func.func @_edl_sum_kernel(%arg0: i32, %arg1: memref<16x128xf32, #tpu.memory_space<vmem>>, %arg2: memref<16x128xbf16, #tpu.memory_space<vmem>>, %arg3: memref<128x128xbf16, #tpu.memory_space<vmem>>, %arg4: memref<8x128xf32, #tpu.memory_space<vmem>>) attributes {dimension_semantics = [#tpu.dimension_semantics<parallel>], iteration_bounds = array<i64: 1>, scalar_prefetch = 0 : i64, scratch_operands = 0 : i64, tpu.core_type = #tpu.core_type<tc>, window_params = [{transform_indices = @transform_0, window_bounds = array<i64: 16, 128>}, {transform_indices = @transform_1, window_bounds = array<i64: 16, 128>}, {pipeline_mode = #tpu.pipeline_mode<synchronous>, transform_indices = @transform_2, window_bounds = array<i64: 128, 128>}, {transform_indices = @transform_3, window_bounds = array<i64: 8, 128>}]} {
    %c0 = arith.constant 0 : index
    %c0_0 = arith.constant 0 : index
    %0 = vector.load %arg1[%c0, %c0_0] : memref<16x128xf32, #tpu.memory_space<vmem>>, vector<16x128xf32>
    %c0_1 = arith.constant 0 : index
    %c0_2 = arith.constant 0 : index
    %1 = vector.load %arg2[%c0_1, %c0_2] : memref<16x128xbf16, #tpu.memory_space<vmem>>, vector<16x128xbf16>
    %2 = arith.extf %1 : vector<16x128xbf16> to vector<16x128xf32>
    %c0_3 = arith.constant 0 : index
    %c0_4 = arith.constant 0 : index
    %3 = vector.load %arg3[%c0_3, %c0_4] : memref<128x128xbf16, #tpu.memory_space<vmem>>, vector<128x128xbf16>
    %cst = arith.constant 5.000000e-01 : f32
    %4 = vector.broadcast %cst : f32 to vector<16x128xf32>
    %5 = arith.cmpf ogt, %2, %4 : vector<16x128xf32>
    %cst_5 = arith.constant 0.000000e+00 : f32
    %6 = vector.broadcast %cst_5 : f32 to vector<16x128xf32>
    %7 = arith.maximumf %0, %6 : vector<16x128xf32>
    %8 = math.absf %0 : vector<16x128xf32>
    %cst_6 = arith.constant 0.000000e+00 : f32
    %9 = vector.broadcast %cst_6 : f32 to vector<16x128xf32>
    %10 = arith.subf %9, %8 : vector<16x128xf32>
    %11 = math.exp %10 : vector<16x128xf32>
    %cst_7 = arith.constant 1.000000e+00 : f32
    %12 = vector.broadcast %cst_7 : f32 to vector<16x128xf32>
    %13 = arith.addf %12, %11 : vector<16x128xf32>
    %14 = math.log %13 : vector<16x128xf32>
    %15 = arith.addf %7, %14 : vector<16x128xf32>
    %cst_8 = arith.constant 1.000000e+00 : f32
    %16 = vector.broadcast %cst_8 : f32 to vector<16x128xf32>
    %17 = arith.addf %15, %16 : vector<16x128xf32>
    %18 = arith.truncf %17 : vector<16x128xf32> to vector<16x128xbf16>
    %19 = arith.extf %18 : vector<16x128xbf16> to vector<16x128xf32>
    %20 = arith.subf %17, %19 : vector<16x128xf32>
    %21 = arith.truncf %20 : vector<16x128xf32> to vector<16x128xbf16>
    %cst_9 = arith.constant dense<0.000000e+00> : vector<16x128xf32>
    %22 = tpu.matmul %18, %3, %cst_9 {dimension_numbers = #tpu.dot_dimension_numbers<[1], [0], [0], [1], [0, 0, 1, 1], [], []>} : vector<16x128xbf16>, vector<128x128xbf16>, vector<16x128xf32> -> vector<16x128xf32>
    %cst_10 = arith.constant dense<0.000000e+00> : vector<16x128xf32>
    %23 = tpu.matmul %21, %3, %cst_10 {dimension_numbers = #tpu.dot_dimension_numbers<[1], [0], [0], [1], [0, 0, 1, 1], [], []>} : vector<16x128xbf16>, vector<128x128xbf16>, vector<16x128xf32> -> vector<16x128xf32>
    %24 = arith.addf %22, %23 : vector<16x128xf32>
    %cst_11 = arith.constant 1.000000e+00 : f32
    %25 = vector.broadcast %cst_11 : f32 to vector<16x128xf32>
    %26 = arith.maximumf %24, %25 : vector<16x128xf32>
    %cst_12 = arith.constant 3.000000e+00 : f32
    %27 = vector.broadcast %cst_12 : f32 to vector<16x128xf32>
    %28 = arith.addf %17, %27 : vector<16x128xf32>
    %29 = arith.mulf %17, %28 : vector<16x128xf32>
    %cst_13 = arith.constant 2.000000e+00 : f32
    %30 = vector.broadcast %cst_13 : f32 to vector<16x128xf32>
    %31 = arith.addf %29, %30 : vector<16x128xf32>
    %32 = arith.mulf %29, %31 : vector<16x128xf32>
    %cst_14 = arith.constant 4.000000e+00 : f32
    %33 = vector.broadcast %cst_14 : f32 to vector<16x128xf32>
    %34 = arith.addf %17, %33 : vector<16x128xf32>
    %35 = math.log %32 : vector<16x128xf32>
    %cst_15 = arith.constant 2.000000e+00 : f32
    %36 = vector.broadcast %cst_15 : f32 to vector<16x128xf32>
    %37 = arith.mulf %36, %17 : vector<16x128xf32>
    %cst_16 = arith.constant 3.000000e+00 : f32
    %38 = vector.broadcast %cst_16 : f32 to vector<16x128xf32>
    %39 = arith.addf %37, %38 : vector<16x128xf32>
    %40 = arith.addf %29, %31 : vector<16x128xf32>
    %41 = arith.mulf %39, %40 : vector<16x128xf32>
    %42 = arith.divf %41, %32 : vector<16x128xf32>
    %43 = math.log %34 : vector<16x128xf32>
    %cst_17 = arith.constant 1.000000e+00 : f32
    %44 = vector.broadcast %cst_17 : f32 to vector<16x128xf32>
    %45 = arith.divf %44, %34 : vector<16x128xf32>
    %46 = arith.mulf %45, %45 : vector<16x128xf32>
    %cst_18 = arith.constant 5.000000e-01 : f32
    %47 = vector.broadcast %cst_18 : f32 to vector<16x128xf32>
    %48 = arith.subf %34, %47 : vector<16x128xf32>
    %49 = arith.mulf %48, %43 : vector<16x128xf32>
    %50 = arith.subf %49, %34 : vector<16x128xf32>
    %cst_19 = arith.constant 0.918938517 : f32
    %51 = vector.broadcast %cst_19 : f32 to vector<16x128xf32>
    %52 = arith.addf %50, %51 : vector<16x128xf32>
    %cst_20 = arith.constant 5.95238118E-4 : f32
    %53 = vector.broadcast %cst_20 : f32 to vector<16x128xf32>
    %54 = arith.mulf %46, %53 : vector<16x128xf32>
    %cst_21 = arith.constant 7.93650805E-4 : f32
    %55 = vector.broadcast %cst_21 : f32 to vector<16x128xf32>
    %56 = arith.subf %55, %54 : vector<16x128xf32>
    %57 = arith.mulf %46, %56 : vector<16x128xf32>
    %cst_22 = arith.constant -0.00277777785 : f32
    %58 = vector.broadcast %cst_22 : f32 to vector<16x128xf32>
    %59 = arith.addf %58, %57 : vector<16x128xf32>
    %60 = arith.mulf %46, %59 : vector<16x128xf32>
    %cst_23 = arith.constant 0.0833333358 : f32
    %61 = vector.broadcast %cst_23 : f32 to vector<16x128xf32>
    %62 = arith.addf %61, %60 : vector<16x128xf32>
    %63 = arith.mulf %45, %62 : vector<16x128xf32>
    %64 = arith.addf %52, %63 : vector<16x128xf32>
    %cst_24 = arith.constant 5.000000e-01 : f32
    %65 = vector.broadcast %cst_24 : f32 to vector<16x128xf32>
    %66 = arith.mulf %65, %45 : vector<16x128xf32>
    %67 = arith.subf %43, %66 : vector<16x128xf32>
    %cst_25 = arith.constant 0.0039682542 : f32
    %68 = vector.broadcast %cst_25 : f32 to vector<16x128xf32>
    %69 = arith.mulf %46, %68 : vector<16x128xf32>
    %cst_26 = arith.constant 0.00833333377 : f32
    %70 = vector.broadcast %cst_26 : f32 to vector<16x128xf32>
    %71 = arith.subf %70, %69 : vector<16x128xf32>
    %72 = arith.mulf %46, %71 : vector<16x128xf32>
    %cst_27 = arith.constant 0.0833333358 : f32
    %73 = vector.broadcast %cst_27 : f32 to vector<16x128xf32>
    %74 = arith.subf %73, %72 : vector<16x128xf32>
    %75 = arith.mulf %46, %74 : vector<16x128xf32>
    %76 = arith.subf %67, %75 : vector<16x128xf32>
    %77 = arith.subf %64, %35 : vector<16x128xf32>
    %78 = arith.subf %76, %42 : vector<16x128xf32>
    %cst_28 = arith.constant 1.000000e+00 : f32
    %79 = vector.broadcast %cst_28 : f32 to vector<16x128xf32>
    %80 = arith.subf %17, %79 : vector<16x128xf32>
    %81 = arith.mulf %80, %78 : vector<16x128xf32>
    %82 = arith.subf %81, %77 : vector<16x128xf32>
    %cst_29 = arith.constant 0.000000e+00 : f32
    %83 = vector.broadcast %cst_29 : f32 to vector<16x128xf32>
    %84 = arith.select %5, %83, %82 : vector<16x128xi1>, vector<16x128xf32>
    %cst_30 = arith.constant 1.000000e+00 : f32
    %85 = vector.broadcast %cst_30 : f32 to vector<16x128xf32>
    %86 = arith.addf %26, %85 : vector<16x128xf32>
    %87 = arith.subf %86, %17 : vector<16x128xf32>
    %88 = math.log %87 : vector<16x128xf32>
    %cst_31 = arith.constant 1.000000e+00 : f32
    %89 = vector.broadcast %cst_31 : f32 to vector<16x128xf32>
    %90 = arith.divf %89, %87 : vector<16x128xf32>
    %91 = arith.mulf %90, %90 : vector<16x128xf32>
    %cst_32 = arith.constant 5.000000e-01 : f32
    %92 = vector.broadcast %cst_32 : f32 to vector<16x128xf32>
    %93 = arith.subf %87, %92 : vector<16x128xf32>
    %94 = arith.mulf %93, %88 : vector<16x128xf32>
    %95 = arith.subf %94, %87 : vector<16x128xf32>
    %cst_33 = arith.constant 0.918938517 : f32
    %96 = vector.broadcast %cst_33 : f32 to vector<16x128xf32>
    %97 = arith.addf %95, %96 : vector<16x128xf32>
    %cst_34 = arith.constant 5.95238118E-4 : f32
    %98 = vector.broadcast %cst_34 : f32 to vector<16x128xf32>
    %99 = arith.mulf %91, %98 : vector<16x128xf32>
    %cst_35 = arith.constant 7.93650805E-4 : f32
    %100 = vector.broadcast %cst_35 : f32 to vector<16x128xf32>
    %101 = arith.subf %100, %99 : vector<16x128xf32>
    %102 = arith.mulf %91, %101 : vector<16x128xf32>
    %cst_36 = arith.constant -0.00277777785 : f32
    %103 = vector.broadcast %cst_36 : f32 to vector<16x128xf32>
    %104 = arith.addf %103, %102 : vector<16x128xf32>
    %105 = arith.mulf %91, %104 : vector<16x128xf32>
    %cst_37 = arith.constant 0.0833333358 : f32
    %106 = vector.broadcast %cst_37 : f32 to vector<16x128xf32>
    %107 = arith.addf %106, %105 : vector<16x128xf32>
    %108 = arith.mulf %90, %107 : vector<16x128xf32>
    %109 = arith.addf %97, %108 : vector<16x128xf32>
    %cst_38 = arith.constant 5.000000e-01 : f32
    %110 = vector.broadcast %cst_38 : f32 to vector<16x128xf32>
    %111 = arith.mulf %110, %90 : vector<16x128xf32>
    %112 = arith.subf %88, %111 : vector<16x128xf32>
    %cst_39 = arith.constant 0.0039682542 : f32
    %113 = vector.broadcast %cst_39 : f32 to vector<16x128xf32>
    %114 = arith.mulf %91, %113 : vector<16x128xf32>
    %cst_40 = arith.constant 0.00833333377 : f32
    %115 = vector.broadcast %cst_40 : f32 to vector<16x128xf32>
    %116 = arith.subf %115, %114 : vector<16x128xf32>
    %117 = arith.mulf %91, %116 : vector<16x128xf32>
    %cst_41 = arith.constant 0.0833333358 : f32
    %118 = vector.broadcast %cst_41 : f32 to vector<16x128xf32>
    %119 = arith.subf %118, %117 : vector<16x128xf32>
    %120 = arith.mulf %91, %119 : vector<16x128xf32>
    %121 = arith.subf %112, %120 : vector<16x128xf32>
    %122 = math.log %26 : vector<16x128xf32>
    %123 = math.log %17 : vector<16x128xf32>
    %124 = arith.subf %122, %123 : vector<16x128xf32>
    %cst_42 = arith.constant 27.899271 : f32
    %125 = vector.broadcast %cst_42 : f32 to vector<16x128xf32>
    %126 = arith.subf %109, %125 : vector<16x128xf32>
    %cst_43 = arith.constant 1.600000e+01 : f32
    %127 = vector.broadcast %cst_43 : f32 to vector<16x128xf32>
    %128 = arith.subf %87, %127 : vector<16x128xf32>
    %129 = arith.mulf %128, %121 : vector<16x128xf32>
    %130 = arith.subf %126, %129 : vector<16x128xf32>
    %cst_44 = arith.constant 2.000000e-01 : f32
    %131 = vector.broadcast %cst_44 : f32 to vector<16x128xf32>
    %132 = arith.mulf %131, %130 : vector<16x128xf32>
    %133 = arith.addf %124, %132 : vector<16x128xf32>
    %cst_45 = arith.constant 2.000000e-01 : f32
    %134 = vector.broadcast %cst_45 : f32 to vector<16x128xf32>
    %135 = arith.mulf %134, %84 : vector<16x128xf32>
    %cst_46 = arith.constant 0.000000e+00 : f32
    %136 = vector.broadcast %cst_46 : f32 to vector<16x128xf32>
    %137 = arith.select %5, %133, %136 : vector<16x128xi1>, vector<16x128xf32>
    %138 = arith.addf %135, %137 : vector<16x128xf32>
    %cst_47 = arith.constant 1.600000e+01 : f32
    %139 = vector.broadcast %cst_47 : f32 to vector<16x128xf32>
    %140 = arith.divf %139, %26 : vector<16x128xf32>
    %cst_48 = arith.constant 0.000000e+00 : f32
    %141 = vector.broadcast %cst_48 : f32 to vector<16x128xf32>
    %142 = arith.subf %141, %140 : vector<16x128xf32>
    %cst_49 = arith.constant 9.99999974E-6 : f32
    %143 = vector.broadcast %cst_49 : f32 to vector<16x128xf32>
    %144 = arith.addf %15, %143 : vector<16x128xf32>
    %145 = math.log %144 : vector<16x128xf32>
    %146 = arith.mulf %142, %145 : vector<16x128xf32>
    %cst_50 = arith.constant 0.000000e+00 : f32
    %147 = vector.broadcast %cst_50 : f32 to vector<16x128xf32>
    %148 = arith.select %5, %146, %147 : vector<16x128xi1>, vector<16x128xf32>
    %149 = arith.addf %138, %148 : vector<16x128xf32>
    %cst_51 = arith.constant dense<0.000000e+00> : vector<128xf32>
    %150 = vector.multi_reduction <add>, %149, %cst_51 [0] : vector<16x128xf32> to vector<128xf32>
    %151 = vector.shape_cast %150 : vector<128xf32> to vector<1x128xf32>
    %cst_52 = arith.constant 1.250000e-01 : f32
    %152 = vector.broadcast %cst_52 : f32 to vector<1x128xf32>
    %153 = arith.mulf %152, %151 : vector<1x128xf32>
    %cst_53 = arith.constant 0.000000e+00 : f32
    %154 = vector.broadcast %cst_53 : f32 to vector<8x128xf32>
    %155 = vector.broadcast %153 : vector<1x128xf32> to vector<8x128xf32>
    %156 = arith.addf %155, %154 : vector<8x128xf32>
    %c0_54 = arith.constant 0 : index
    %c0_55 = arith.constant 0 : index
    %157 = vector.load %arg4[%c0_54, %c0_55] : memref<8x128xf32, #tpu.memory_space<vmem>>, vector<8x128xf32>
    tpu.vector_store %arg4[%c0_54, %c0_55], %156 {strides = array<i32>} : memref<8x128xf32, #tpu.memory_space<vmem>>, vector<8x128xf32>,
    return
  }
  func.func @transform_0(%arg0: i32) -> (i32, i32) {
    %c0_i32 = arith.constant 0 : i32
    %c0_i32_0 = arith.constant 0 : i32
    return %arg0, %c0_i32 : i32, i32
  }
  func.func @transform_1(%arg0: i32) -> (i32, i32) {
    %c0_i32 = arith.constant 0 : i32
    %c0_i32_0 = arith.constant 0 : i32
    return %arg0, %c0_i32 : i32, i32
  }
  func.func @transform_2(%arg0: i32) -> (i32, i32) {
    %c0_i32 = arith.constant 0 : i32
    %c0_i32_0 = arith.constant 0 : i32
    %c0_i32_1 = arith.constant 0 : i32
    return %c0_i32, %c0_i32_0 : i32, i32
  }
  func.func @transform_3(%arg0: i32) -> (i32, i32) {
    %c0_i32 = arith.constant 0 : i32
    %c0_i32_0 = arith.constant 0 : i32
    return %arg0, %c0_i32 : i32, i32
  }
}

</mosaic_0001>

<bundles_post_ra>
// kernel: tpu_custom_call.1
= control target key start
LH: loop header
LB: loop body
LE: loop exit
PB: predicated region body
PF: predicated region fallthrough
CT: control target
= control target key end

     0   :  { %8 = vsyncpa [#allocation3], 0  ;;  %s928_s0 = inlined_call_operand.hbm [shape: f32[16,128], index: 0, kind: input, shape index: {}]   ;;  %s929_s1 = inlined_call_operand.hbm [shape: bf16[16,128], index: 1, kind: input, shape index: {}]   ;;  %s930_s2 = inlined_call_operand.hbm [shape: bf16[128,128], index: 2, kind: input, shape index: {}]   ;;  %s931_s3 = inlined_call_operand.hbm [shape: f32[8,128], index: 3, kind: output, shape index: {}]  }
   0x1   :  { %9 = vsyncpa [#allocation6], 0 }
   0x2   :  { %10 = vsyncpa [#allocation4], 0  ;;  %s695_s12 = smov [#allocation5]   ;;  %s601_s16 = scalar_lea.hbm %s929_s1, 128 }
   0x3   :  { %s28_s13 = sshll.u32 %s695_s12, 4  ;;  %p602_p0 = scmp.ne.s32.totalorder %s929_s1, %s601_s16  ;;  %s29_s13 = int_to_ptr.vmem [resolvable:$true] %s28_s13 }
   0x4   :  { %p605_p1 = scmp.lt.u32.totalorder %s601_s16, %s929_s1 }
   0x6   :  { %p607_p2 = pnand %p605_p1, %p602_p0 }
   0x8   :  { %610 = shalt.err (!%p607_p2)
}
   0x9   :  { %s611_s21 = scalar_lea.vmem %s29_s13, 128  ;;  %p616_p4 = scmp.lt.s32.totalorder %s29_s13, %s29_s13 }
   0xa   :  { %p612_p3 = scmp.ne.s32.totalorder %s29_s13, %s611_s21  ;;  %p617_p5 = scmp.lt.s32.totalorder %s611_s21, %s611_s21 }
   0xc   :  { %p618_p6 = por %p617_p5, %p616_p4 }
   0xe   :  { %p619_p7 = pnand %p618_p6, %p612_p3 }
  0x10   :  { %622 = shalt.err (!%p619_p7)
}
  0x11   :  { %s696_s22 = smov 64   ;;  %s697_s23 = smov 4  }
  0x12   :  { %34 = dma.hbm_to_vmem [thread:$0]  %s929_s1, 128, %s29_s13, [#allocation6], %s696_s22, %s696_s22, %s697_s23  }
  0x13   :  { %s698_s26 = smov [#allocation2]   ;;  %s623_s30 = scalar_lea.hbm %s928_s0, 256 }
  0x14   :  { %s16_s27 = sshll.u32 %s698_s26, 4  ;;  %p624_p8 = scmp.ne.s32.totalorder %s928_s0, %s623_s30  ;;  %s17_s27 = int_to_ptr.vmem [resolvable:$true] %s16_s27 }
  0x15   :  { %p627_p9 = scmp.lt.u32.totalorder %s623_s30, %s928_s0 }
  0x17   :  { %p629_p10 = pnand %p627_p9, %p624_p8 }
  0x19   :  { %632 = shalt.err (!%p629_p10)
}
  0x1a   :  { %s633_s8 = scalar_lea.vmem %s17_s27, 256  ;;  %p638_p12 = scmp.lt.s32.totalorder %s17_s27, %s17_s27 }
  0x1b   :  { %p634_p11 = scmp.ne.s32.totalorder %s17_s27, %s633_s8  ;;  %p639_p13 = scmp.lt.s32.totalorder %s633_s8, %s633_s8 }
  0x1d   :  { %p640_p0 = por %p639_p13, %p638_p12 }
  0x1f   :  { %p641_p1 = pnand %p640_p0, %p634_p11 }
  0x21   :  { %644 = shalt.err (!%p641_p1)
}
  0x22   :  { %s699_s1 = smov 128   ;;  %s700_s9 = smov 8  }
  0x23   :  { %22 = dma.hbm_to_vmem [thread:$0]  %s928_s0, 256, %s17_s27, [#allocation3], %s699_s1, %s699_s1, %s700_s9  }
  0x24   :  { %s701_s12 = smov [#allocation7]   ;;  %s645_s16 = scalar_lea.hbm %s930_s2, 1024 }
  0x25   :  { %s40_s13 = sshll.u32 %s701_s12, 4  ;;  %p646_p2 = scmp.ne.s32.totalorder %s930_s2, %s645_s16  ;;  %s41_s13 = int_to_ptr.vmem [resolvable:$true] %s40_s13 }
  0x26   :  { %p649_p3 = scmp.lt.u32.totalorder %s645_s16, %s930_s2 }
  0x28   :  { %p651_p4 = pnand %p649_p3, %p646_p2 }
  0x2a   :  { %654 = shalt.err (!%p651_p4)
}
  0x2b   :  { %s655_s21 = scalar_lea.vmem %s41_s13, 1024  ;;  %p660_p6 = scmp.lt.s32.totalorder %s41_s13, %s41_s13 }
  0x2c   :  { %p656_p5 = scmp.ne.s32.totalorder %s41_s13, %s655_s21  ;;  %p661_p7 = scmp.lt.s32.totalorder %s655_s21, %s655_s21 }
  0x2e   :  { %p662_p8 = por %p661_p7, %p660_p6 }
  0x30   :  { %p663_p9 = pnand %p662_p8, %p656_p5 }
  0x32   :  { %666 = shalt.err (!%p663_p9)
}
  0x33   :  { %46 = dma.hbm_to_vmem [thread:$0]  %s930_s2, 1024, %s41_s13, [#allocation6], %s696_s22, %s696_s22, %s697_s23  }
  0x34   :  { %689 = dma.done.wait [#allocation3], 256  }
  0x35   :  { %690 = vsyncadd [#allocation3], 4294967040 }
  0x36   :  { %691 = dma.done.wait [#allocation6], 1152  }
  0x37   :  { %692 = vsyncadd [#allocation6], 4294966144  ;;  %v702_v0 = vmov 0.0   ;;  %vm703_vm0 = vmmov 0   ;;  %v545_v1 = vld [vmem:[#allocation7] sm:$0xff]   ;;  %v546_v2 = vld [vmem:[#allocation7 + $0x8] sm:$0xff]  }
  0x38   :  { %513 = vmatprep.subr.bf16.mxu0 %v702_v0  ;;  %493 = vmatprep.subr.bf16.mxu1 %v702_v0  ;;  %v547_v3 = vld [vmem:[#allocation7 + $0x10] sm:$0xff]   ;;  %v57_v4 = vld [vmem:[#allocation2] sm:$0xff]  ;;  %v548_v8 = vld [vmem:[#allocation7 + $0x18] sm:$0xff]   ;;  %s704_s2 = smov [#allocation8]  }
  0x39   :  { %529 = vmatprep.mubr.msk.bf16.mxu0 %vm703_vm0, %v702_v0  ;;  %509 = vmatprep.mubr.msk.bf16.mxu1 %vm703_vm0, %v702_v0  ;;  %v58_v5 = vld [vmem:[#allocation2 + $0x8] sm:$0xff]  ;;  %v83_v6 = vand.u32 2147483647, %v57_v4  ;;  %v549_v13 = vld [vmem:[#allocation7 + $0x20] sm:$0xff]   ;;  %v550_v14 = vld [vmem:[#allocation7 + $0x28] sm:$0xff]   ;;  %v81_v21 = vmax.f32 %v57_v4, 0.0 }
  0x3a   :  { %514 = vmatpush3.bf16.msra.mxu0 %v545_v1  ;;  %494 = vmatpush3.bf16.msra.mxu1 %v545_v1  ;;  %v84_v7 = vand.u32 2147483647, %v58_v5  ;;  %v551_v15 = vld [vmem:[#allocation7 + $0x30] sm:$0xff]   ;;  %v552_v18 = vld [vmem:[#allocation7 + $0x38] sm:$0xff]   ;;  %v82_v23 = vmax.f32 %v58_v5, 0.0  ;;  %s443_s22 = sshll.u32 %s704_s2, 4  ;;  %s444_s22 = int_to_ptr.vmem [resolvable:$true] %s443_s22 }
  0x3b   :  { %515 = vmatprep.subr.bf16.mxu0 %v702_v0  ;;  %495 = vmatprep.subr.bf16.mxu1 %v702_v0  ;;  %v85_v9 = vsub.f32 0.0, %v83_v6  ;;  %s667_s23 = scalar_lea.vmem %s444_s22, 128  ;;  %p672_p11 = scmp.lt.s32.totalorder %s444_s22, %s444_s22 }
  0x3c   :  { %v86_v10 = vsub.f32 0.0, %v84_v7  ;;  %p668_p10 = scmp.ne.s32.totalorder %s444_s22, %s667_s23  ;;  %p673_p12 = scmp.lt.s32.totalorder %s667_s23, %s667_s23 }
  0x3d   :  { %v87_v11 = vmul.f32 1.442695, %v85_v9 }
  0x3e   :  { %516 = vmatpush3.bf16.msra.mxu0 %v546_v2  ;;  %496 = vmatpush3.bf16.msra.mxu1 %v546_v2  ;;  %v89_v12 = vmul.f32 1.442695, %v86_v10  ;;  %p674_p13 = por %p673_p12, %p672_p11 }
  0x3f   :  { %517 = vmatprep.subr.bf16.mxu0 %v702_v0  ;;  %497 = vmatprep.subr.bf16.mxu1 %v702_v0  ;;  %553 = vpow2.f32 %v87_v11 }
  0x40   :  { %555 = vpow2.f32 %v89_v12  ;;  %p675_p0 = pnand %p674_p13, %p668_p10 }
  0x42   :  { %518 = vmatpush3.bf16.msra.mxu0 %v547_v3  ;;  %498 = vmatpush3.bf16.msra.mxu1 %v547_v3 }
  0x43   :  { %519 = vmatprep.subr.bf16.mxu0 %v702_v0  ;;  %499 = vmatprep.subr.bf16.mxu1 %v702_v0 }
  0x46   :  { %520 = vmatpush3.bf16.msra.mxu0 %v548_v8  ;;  %500 = vmatpush3.bf16.msra.mxu1 %v548_v8 }
  0x47   :  { %521 = vmatprep.subr.bf16.mxu0 %v702_v0  ;;  %501 = vmatprep.subr.bf16.mxu1 %v702_v0 }
  0x49   :  { %v554_v16 = vpop.eup %553 }
  0x4a   :  { %522 = vmatpush3.bf16.msra.mxu0 %v549_v13  ;;  %502 = vmatpush3.bf16.msra.mxu1 %v549_v13  ;;  %v556_v17 = vpop.eup %555  ;;  %v91_v19 = vadd.f32 1.0, %v554_v16 }
  0x4b   :  { %523 = vmatprep.subr.bf16.mxu0 %v702_v0  ;;  %503 = vmatprep.subr.bf16.mxu1 %v702_v0  ;;  %v92_v20 = vadd.f32 1.0, %v556_v17 }
  0x4c   :  { %557 = vlog2.f32 %v91_v19 }
  0x4d   :  { %559 = vlog2.f32 %v92_v20 }
  0x4e   :  { %524 = vmatpush3.bf16.msra.mxu0 %v550_v14  ;;  %504 = vmatpush3.bf16.msra.mxu1 %v550_v14 }
  0x4f   :  { %525 = vmatprep.subr.bf16.mxu0 %v702_v0  ;;  %505 = vmatprep.subr.bf16.mxu1 %v702_v0 }
  0x52   :  { %526 = vmatpush3.bf16.msra.mxu0 %v551_v15  ;;  %506 = vmatpush3.bf16.msra.mxu1 %v551_v15 }
  0x53   :  { %527 = vmatprep.subr.bf16.mxu0 %v702_v0  ;;  %507 = vmatprep.subr.bf16.mxu1 %v702_v0 }
  0x56   :  { %528 = vmatpush3.bf16.msra.mxu0 %v552_v18  ;;  %508 = vmatpush3.bf16.msra.mxu1 %v552_v18  ;;  %v558_v22 = vpop.eup %557 }
  0x57   :  { %v560_v24 = vpop.eup %559  ;;  %v94_v25 = vmul.f32 0.6931472, %v558_v22 }
  0x58   :  { %v96_v26 = vmul.f32 0.6931472, %v560_v24 }
  0x59   :  { %v767_v27 = vadd.f32 %v94_v25, %v81_v21 }
  0x5a   :  { %v769_v28 = vadd.f32 %v96_v26, %v82_v23 }
  0x5b   :  { %v772_v29 = vadd.f32 1.0, %v767_v27 }
  0x5c   :  { %v775_v30 = vadd.f32 1.0, %v769_v28 }
  0x5d   :  { %v782_v37 = vadd.f32 4.0, %v772_v29  ;;  %v239_v40 = vadd.f32 3.0, %v772_v29  ;;  %v253_v20 = vmul.f32 2.0, %v772_v29 }
  0x5e   :  { %v101_v31 = vpack.c.bf16 %v775_v30, %v772_v29  ;;  %v785_v38 = vadd.f32 4.0, %v775_v30  ;;  %v240_v42 = vadd.f32 3.0, %v775_v30  ;;  %v254_v21 = vmul.f32 2.0, %v775_v30 }
  0x5f   :  { %561 = vrcp.f32 %v782_v37  ;;  %v241_v44 = vmul.f32 %v239_v40, %v772_v29  ;;  %v461_v14 = vadd.f32 -0.5, %v782_v37 }
  0x60   :  { %530 = vmatmul.mubr.bf16.vlgmr.msra.gmra.mrb[0].mxu0 %v101_v31  ;;  %v102_v32 = vunpack.c.l.bf16 %v101_v31  ;;  %v103_v33 = vunpack.c.h.bf16 %v101_v31  ;;  %563 = vrcp.f32 %v785_v38  ;;  %v242_v47 = vmul.f32 %v240_v42, %v775_v30 }
  0x61   :  { %565 = vlog2.f32 %v782_v37  ;;  %v243_v51 = vadd.f32 2.0, %v241_v44  ;;  %v462_v17 = vadd.f32 -0.5, %v785_v38 }
  0x62   :  { %v104_v34 = vsub.f32 %v772_v29, %v102_v32  ;;  %v105_v35 = vsub.f32 %v775_v30, %v103_v33  ;;  %567 = vlog2.f32 %v785_v38  ;;  %v244_v54 = vadd.f32 2.0, %v242_v47 }
  0x63   :  { %v245_v57 = vmul.f32 %v243_v51, %v241_v44  ;;  %v415_v32 = vadd.f32 1e-05, %v767_v27  ;;  %v255_v33 = vadd.f32 3.0, %v253_v20 }
  0x64   :  { %v106_v36 = vpack.c.bf16 %v105_v35, %v104_v34  ;;  %v246_v62 = vmul.f32 %v244_v54, %v242_v47  ;;  %v257_v34 = vadd.f32 %v243_v51, %v241_v44  ;;  %v258_v40 = vadd.f32 %v244_v54, %v242_v47 }
  0x65   :  { %569 = vrcp.f32 %v245_v57 }
  0x66   :  { %510 = vmatmul.mubr.bf16.vlgmr.msra.gmra.mrb[0].mxu1 %v106_v36  ;;  %571 = vlog2.f32 %v245_v57  ;;  %v256_v36 = vadd.f32 3.0, %v254_v21  ;;  %v259_v51 = vmul.f32 %v257_v34, %v255_v33 }
  0x67   :  { %573 = vrcp.f32 %v246_v62 }
  0x68   :  { %575 = vlog2.f32 %v246_v62 }
  0x69   :  { %v789_v39 = vpop.eup %561 }
  0x6a   :  { %v792_v41 = vpop.eup %563  ;;  %v797_v43 = vmul.f32 %v789_v39, %v789_v39 }
  0x6b   :  { %v802_v45 = vmul.f32 %v792_v41, %v792_v41  ;;  %v566_v0 = vpop.eup %565  ;;  %v300_v47 = vmul.f32 0.5, %v792_v41 }
  0x6c   :  { %v283_v49 = vmul.f32 0.0005952381, %v797_v43  ;;  %v303_v63 = vmul.f32 0.003968254, %v797_v43  ;;  %v568_v6 = vpop.eup %567  ;;  %v817_v9 = vmul.f32 0.6931472, %v566_v0 }
  0x6d   :  { %v284_v52 = vmul.f32 0.0005952381, %v802_v45  ;;  %v304_v10 = vmul.f32 0.003968254, %v802_v45  ;;  %v825_v16 = vmul.f32 0.6931472, %v568_v6 }
  0x6e   :  { %v285_v55 = vsub.f32 0.0007936508, %v283_v49  ;;  %v305_v11 = vsub.f32 0.008333334, %v303_v63  ;;  %v277_v23 = vmul.f32 %v461_v14, %v817_v9 }
  0x6f   :  { %v286_v58 = vsub.f32 0.0007936508, %v284_v52  ;;  %v306_v22 = vsub.f32 0.008333334, %v304_v10  ;;  %v278_v25 = vmul.f32 %v462_v17, %v825_v16  ;;  %v570_v35 = vpop.eup %569 }
  0x70   :  { %v287_v4 = vmul.f32 %v285_v55, %v797_v43  ;;  %v307_v31 = vmul.f32 %v305_v11, %v797_v43  ;;  %v279_v49 = vsub.f32 %v277_v23, %v782_v37  ;;  %v299_v55 = vmul.f32 0.5, %v789_v39 }
  0x71   :  { %v288_v5 = vmul.f32 %v286_v58, %v802_v45  ;;  %v308_v42 = vmul.f32 %v306_v22, %v802_v45  ;;  %v280_v27 = vsub.f32 %v278_v25, %v785_v38 }
  0x72   :  { %v289_v15 = vadd.f32 -0.0027777778, %v287_v4  ;;  %v309_v44 = vsub.f32 0.083333336, %v307_v31  ;;  %v281_v37 = vadd.f32 0.9189385, %v279_v49 }
  0x73   :  { %v290_v18 = vadd.f32 -0.0027777778, %v288_v5  ;;  %v310_v57 = vsub.f32 0.083333336, %v308_v42  ;;  %v282_v38 = vadd.f32 0.9189385, %v280_v27 }
  0x74   :  { %v291_v24 = vmul.f32 %v289_v15, %v797_v43  ;;  %v311_v62 = vmul.f32 %v309_v44, %v797_v43 }
  0x75   :  { %v292_v26 = vmul.f32 %v290_v18, %v802_v45  ;;  %v312_v6 = vmul.f32 %v310_v57, %v802_v45 }
 0x133   :  { %v230_v46 = vpop.f32.mrb[0].mxu0 }
 0x134   :  { %v531_v48 = vpop.f32.mrb[1].mxu0 }
 0x135   :  { %v233_v50 = vpop.f32.mrb[2].mxu0  ;;  %v416_v48 = vadd.f32 1e-05, %v769_v28 }
 0x136   :  { %v532_v53 = vpop.f32.mrb[3].mxu0 }
 0x137   :  { %v294_v53 = vadd.f32 0.083333336, %v292_v26 }
 0x139   :  { %v189_v56 = vpop.f32.mrb[0].mxu1 }
 0x13a   :  { %v231_v59 = vadd.f32 %v230_v46, %v189_v56  ;;  %v511_v60 = vpop.f32.mrb[1].mxu1  ;;  %v572_v46 = vpop.eup %571  ;;  %v260_v56 = vmul.f32 %v258_v40, %v256_v36 }
 0x13b   :  { %v192_v61 = vpop.f32.mrb[2].mxu1  ;;  %v574_v52 = vpop.eup %573  ;;  %v296_v60 = vmul.f32 %v792_v41, %v294_v53  ;;  %v859_v0 = vmul.f32 0.6931472, %v572_v46  ;;  %v463_v41 = vadd.f32 -1.0, %v772_v29 }
 0x13c   :  { %v810_v1 = vmax.f32 %v231_v59, 1.0  ;;  %v234_v2 = vadd.f32 %v233_v50, %v192_v61  ;;  %v512_v3 = vpop.f32.mrb[3].mxu1  ;;  %v293_v50 = vadd.f32 0.083333336, %v291_v24  ;;  %v576_v54 = vpop.eup %575  ;;  %v301_v61 = vsub.f32 %v817_v9, %v299_v55 }
 0x13d   :  { %v302_v3 = vsub.f32 %v825_v16, %v300_v47  ;;  %v264_v5 = vmul.f32 %v574_v52, %v260_v56  ;;  %v873_v14 = vadd.f32 %v296_v60, %v282_v38  ;;  %v472_v47 = vld [vmem:[#allocation5] sm:$0xff]  }
 0x13e   :  { %v327_v7 = vadd.f32 1.0, %v810_v1  ;;  %v815_v8 = vmax.f32 %v234_v2, 1.0  ;;  %v295_v58 = vmul.f32 %v789_v39, %v293_v50  ;;  %v262_v2 = vmul.f32 %v570_v35, %v259_v51 }
 0x13f   :  { %v864_v39 = vmul.f32 0.6931472, %v576_v54  ;;  %v313_v15 = vsub.f32 %v301_v61, %v311_v62  ;;  %v314_v21 = vsub.f32 %v302_v3, %v312_v6  ;;  %v464_v35 = vadd.f32 -1.0, %v775_v30 }
 0x140   :  { %v821_v12 = vsub.f32 %v327_v7, %v772_v29  ;;  %v328_v13 = vadd.f32 1.0, %v815_v8  ;;  %v868_v11 = vadd.f32 %v295_v58, %v281_v37 }
 0x141   :  { %v317_v49 = vsub.f32 %v313_v15, %v262_v2  ;;  %v318_v50 = vsub.f32 %v314_v21, %v264_v5  ;;  %v473_v5 = vunpack.c.l.bf16 %v472_v47 }
 0x142   :  { %577 = vlog2.f32 %v821_v12  ;;  %v830_v19 = vsub.f32 %v328_v13, %v775_v30  ;;  %v465_v17 = vadd.f32 -0.5, %v821_v12 }
 0x143   :  { %579 = vrcp.f32 %v821_v12  ;;  %v321_v38 = vmul.f32 %v463_v41, %v317_v49  ;;  %v322_v60 = vmul.f32 %v464_v35, %v318_v50  ;;  %vm895_vm1 = vcmp.gt.f32.partialorder %v473_v5, 0.5 }
 0x144   :  { %581 = vrcp.f32 %v830_v19  ;;  %v466_v33 = vadd.f32 -0.5, %v830_v19 }
 0x145   :  { %583 = vlog2.f32 %v830_v19 }
 0x146   :  { %585 = vlog2.f32 %v772_v29 }
 0x147   :  { %587 = vlog2.f32 %v415_v32 }
 0x148   :  { %589 = vlog2.f32 %v775_v30  ;;  %v315_v30 = vsub.f32 %v868_v11, %v859_v0 }
 0x149   :  { %591 = vlog2.f32 %v416_v48 }
 0x14a   :  { %593 = vlog2.f32 %v810_v1  ;;  %v323_v15 = vsub.f32 %v321_v38, %v315_v30 }
 0x14b   :  { %595 = vrcp.f32 %v810_v1 }
 0x14c   :  { %v578_v28 = vpop.eup %577  ;;  %597 = vrcp.f32 %v815_v8 }
 0x14d   :  { %v852_v59 = vpop.eup %579  ;;  %v332_v9 = vmul.f32 0.6931472, %v578_v28  ;;  %599 = vlog2.f32 %v815_v8  ;;  %v316_v8 = vsub.f32 %v873_v14, %v864_v39  ;;  %v469_v39 = vadd.f32 -16.0, %v821_v12 }
 0x14e   :  { %v339_v63 = vmul.f32 %v852_v59, %v852_v59  ;;  %v862_v4 = vpop.eup %581  ;;  %v365_v32 = vmul.f32 0.5, %v852_v59 }
 0x14f   :  { %v584_v7 = vpop.eup %583  ;;  %v340_v13 = vmul.f32 %v862_v4, %v862_v4  ;;  %v343_v23 = vmul.f32 %v465_v17, %v332_v9  ;;  %v366_v51 = vmul.f32 0.5, %v862_v4 }
 0x150   :  { %v349_v43 = vmul.f32 0.0005952381, %v339_v63  ;;  %v369_v10 = vmul.f32 0.003968254, %v339_v63  ;;  %v586_v16 = vpop.eup %585  ;;  %v334_v29 = vmul.f32 0.6931472, %v584_v7  ;;  %v367_v56 = vsub.f32 %v332_v9, %v365_v32 }
 0x151   :  { %v350_v20 = vmul.f32 0.0005952381, %v340_v13  ;;  %v878_v22 = vpop.eup %587  ;;  %v370_v26 = vmul.f32 0.003968254, %v340_v13  ;;  %v345_v52 = vsub.f32 %v343_v23, %v821_v12  ;;  %v470_v23 = vadd.f32 -16.0, %v830_v19 }
 0x152   :  { %v351_v45 = vsub.f32 0.0007936508, %v349_v43  ;;  %v371_v18 = vsub.f32 0.008333334, %v369_v10  ;;  %v590_v31 = vpop.eup %589  ;;  %v344_v46 = vmul.f32 %v466_v33, %v334_v29  ;;  %v368_v7 = vsub.f32 %v334_v29, %v366_v51 }
 0x153   :  { %v352_v34 = vsub.f32 0.0007936508, %v350_v20  ;;  %v592_v1 = vpop.eup %591  ;;  %v372_v42 = vsub.f32 0.008333334, %v370_v26  ;;  %v347_v62 = vadd.f32 0.9189385, %v345_v52  ;;  %v474_v10 = vunpack.c.h.bf16 %v472_v47 }
 0x154   :  { %v353_v24 = vmul.f32 %v351_v45, %v339_v63  ;;  %v373_v25 = vmul.f32 %v371_v18, %v339_v63  ;;  %v594_v28 = vpop.eup %593  ;;  %v346_v37 = vsub.f32 %v344_v46, %v830_v19  ;;  %v386_v43 = vmul.f32 0.6931472, %v586_v16 }
 0x155   :  { %v354_v48 = vmul.f32 %v352_v34, %v340_v13  ;;  %v374_v55 = vmul.f32 %v372_v42, %v340_v13  ;;  %v596_v61 = vpop.eup %595  ;;  %v382_v45 = vmul.f32 0.6931472, %v594_v28  ;;  %v324_v20 = vsub.f32 %v322_v60, %v316_v8 }
 0x156   :  { %v355_v36 = vadd.f32 -0.0027777778, %v353_v24  ;;  %v375_v40 = vsub.f32 0.083333336, %v373_v25  ;;  %v598_v0 = vpop.eup %597  ;;  %v348_v11 = vadd.f32 0.9189385, %v346_v37 }
 0x157   :  { %v356_v44 = vadd.f32 -0.0027777778, %v354_v48  ;;  %v376_v57 = vsub.f32 0.083333336, %v374_v55  ;;  %v600_v17 = vpop.eup %599  ;;  %v412_v29 = vmul.f32 16.0, %v598_v0  ;;  %v325_v33 = vsel %vm895_vm1, 0.0, %v323_v15 }
 0x158   :  { %v357_v27 = vmul.f32 %v355_v36, %v339_v63  ;;  %v377_v53 = vmul.f32 %v375_v40, %v339_v63  ;;  %v418_v24 = vmul.f32 0.6931472, %v878_v22  ;;  %v384_v25 = vmul.f32 0.6931472, %v600_v17 }
 0x159   :  { %v358_v58 = vmul.f32 %v356_v44, %v340_v13  ;;  %v378_v3 = vmul.f32 %v376_v57, %v340_v13  ;;  %v410_v13 = vmul.f32 16.0, %v596_v61  ;;  %v389_v34 = vsub.f32 %v382_v45, %v386_v43 }
 0x15a   :  { %v359_v54 = vadd.f32 0.083333336, %v357_v27  ;;  %v379_v2 = vsub.f32 %v367_v56, %v377_v53  ;;  %vm902_vm2 = vcmp.gt.f32.partialorder %v474_v10, 0.5  ;;  %v420_v19 = vmul.f32 0.6931472, %v592_v1 }
 0x15b   :  { %v360_v6 = vadd.f32 0.083333336, %v358_v58  ;;  %v380_v41 = vsub.f32 %v368_v7, %v378_v3  ;;  %v413_v40 = vsub.f32 0.0, %v410_v13  ;;  %v414_v46 = vsub.f32 0.0, %v412_v29 }
 0x15c   :  { %v361_v63 = vmul.f32 %v852_v59, %v359_v54  ;;  %v395_v59 = vmul.f32 %v469_v39, %v379_v2  ;;  %v326_v22 = vsel %vm902_vm2, 0.0, %v324_v20  ;;  %v403_v48 = vmul.f32 0.2, %v325_v33 }
 0x15d   :  { %v362_v14 = vmul.f32 %v862_v4, %v360_v6  ;;  %v388_v4 = vmul.f32 0.6931472, %v590_v31  ;;  %v396_v32 = vmul.f32 %v470_v23, %v380_v41  ;;  %v404_v27 = vmul.f32 0.2, %v326_v22 }
 0x15e   :  { %v363_v9 = vadd.f32 %v361_v63, %v347_v62  ;;  %v421_v53 = vmul.f32 %v418_v24, %v413_v40  ;;  %v422_v44 = vmul.f32 %v420_v19, %v414_v46 }
 0x15f   :  { %v364_v21 = vadd.f32 %v362_v14, %v348_v11  ;;  %v390_v49 = vsub.f32 %v384_v25, %v388_v4 }
 0x160   :  { %v467_v18 = vadd.f32 -27.899271, %v363_v9  ;;  %v423_v47 = vsel %vm895_vm1, %v421_v53, 0.0  ;;  %v424_v54 = vsel %vm902_vm2, %v422_v44, 0.0 }
 0x161   :  { %v468_v26 = vadd.f32 -27.899271, %v364_v21 }
 0x162   :  { %v397_v12 = vsub.f32 %v467_v18, %v395_v59 }
 0x163   :  { %v398_v42 = vsub.f32 %v468_v26, %v396_v32 }
 0x164   :  { %v399_v35 = vmul.f32 0.2, %v397_v12 }
 0x165   :  { %v400_v50 = vmul.f32 0.2, %v398_v42 }
 0x166   :  { %v401_v31 = vadd.f32 %v399_v35, %v389_v34 }
 0x167   :  { %v402_v55 = vadd.f32 %v400_v50, %v390_v49 }
 0x168   :  { %v405_v52 = vsel %vm895_vm1, %v401_v31, 0.0 }
 0x169   :  { %v407_v51 = vadd.f32 %v405_v52, %v403_v48  ;;  %v406_v1 = vsel %vm902_vm2, %v402_v55, 0.0 }
 0x16a   :  { %v408_v30 = vadd.f32 %v406_v1, %v404_v27 }
 0x16b   :  { %v425_v56 = vadd.f32 %v423_v47, %v407_v51 }
 0x16c   :  { %v426_v57 = vadd.f32 %v424_v54, %v408_v30 }
 0x16e   :  { %v427_v8 = vadd.f32 %v426_v57, %v425_v56 }
 0x170   :  { %v428_v28 = vrot.slane %v427_v8, 4 }
 0x172   :  { %v429_v37 = vadd.f32 %v428_v28, %v427_v8 }
 0x174   :  { %v430_v58 = vrot.slane %v429_v37, 2 }
 0x176   :  { %v431_v38 = vadd.f32 %v430_v58, %v429_v37 }
 0x178   :  { %v432_v60 = vrot.slane %v431_v38, 1 }
 0x17a   :  { %v433_v61 = vadd.f32 %v432_v60, %v431_v38 }
 0x17c   :  { %v434_v62 = vmul.f32 0.125, %v433_v61 }
 0x17e   :  { %436 = vst [vmem:[#allocation8] sm:$0xff] %v434_v62 }
 0x17f   :  { %678 = shalt.err (!%p675_p0)
}
 0x180   :  { %s679_s27 = scalar_lea.hbm %s931_s3, 128 }
 0x181   :  { %p680_p1 = scmp.ne.s32.totalorder %s931_s3, %s679_s27  ;;  %p683_p2 = scmp.lt.u32.totalorder %s679_s27, %s931_s3 }
 0x183   :  { %p685_p3 = pnand %p683_p2, %p680_p1 }
 0x185   :  { %688 = shalt.err (!%p685_p3)
}
 0x186   :  { %446 = dma.vmem_to_hbm [thread:$0]  %s444_s22, 128, %s931_s3, [#allocation4]  }
 0x187   :  { %693 = dma.done.wait [#allocation4], 128  }
 0x188   :  { %694 = vsyncadd [#allocation4], 4294967168 }
 0x189   :  { %450 = vsyncpa [#allocation3], 1 }
 0x18a   :  { %451 = vsyncpa [#allocation6], 1 }
 0x18b   :  { %452 = vsyncpa [#allocation4], 1 }

</bundles_post_ra>
